<compile_context>
chip_gen: v5e
topology: v5e:2x2
jax: 0.10.0
libtpu: 0.0.40
codegen_flags: <defaults>
</compile_context>

<pallas_src>
import math

import jax
import jax.numpy as jnp
from jax.experimental import pallas as pl
from jax.experimental.pallas import tpu as pltpu


def _embed_kernel(x_ref, bias_ref, w_ref, o_ref):
    # x_ref    : (TB, L, input_dim)   row tile (TB batch elements, all L steps)
    # bias_ref : (L, d_model)         fused per-position bias (resident in VMEM)
    # w_ref    : (input_dim, d_model) fused weight            (resident in VMEM)
    # o_ref    : (TB, L, d_model)
    x = x_ref[...]
    w = w_ref[...]
    bias = bias_ref[...]
    tb, l, input_dim = x.shape
    d_model = w.shape[1]

    # Start the accumulator from the broadcast bias (single hoisted broadcast).
    acc = jnp.broadcast_to(bias[None, :, :], (tb, l, d_model)).astype(jnp.float32)

    if input_dim <= 8:
        # K is tiny (input_dim=2): a K->128-padded MXU pass would waste ~98% of
        # the systolic array, so do the contraction as VPU broadcast-FMAs.
        for k in range(input_dim):
            acc = acc + x[:, :, k:k + 1] * w[k:k + 1, :]
    else:
        acc = acc + jax.lax.dot_general(
            x, w, (((2,), (0,)), ((), ())),
            preferred_element_type=jnp.float32,
        )

    # TODO(synk): dropout omitted (module's self.dropout is identity in eval mode).
    o_ref[...] = acc.astype(o_ref.dtype)


def one_input_embedding(x, pos_encoding, w1, b1, w2, b2, *, start_time=0, batch_tile=None):
    """
    x            : (B, L, input_dim) float32
    pos_encoding : (max_len, d_model) float32
    w1           : (d_model, input_dim), b1 : (d_model,)
    w2           : (d_model, 2*d_model), b2 : (d_model,)
    returns      : (B, L, d_model)
    """
    B, L, input_dim = x.shape
    d_model = w1.shape[0]
    max_len = pos_encoding.shape[0]
    assert L + start_time <= max_len

    # --- Affine fusion (cheap one-time XLA matmuls, outside the kernel) ------
    w2a = w2[:, :d_model]                                   # acts on w1 output
    w2b = w2[:, d_model:]                                   # acts on pos encoding
    w_fused = w1.T @ w2a.T                                  # (input_dim, d_model)
    pe = jax.lax.dynamic_slice_in_dim(pos_encoding, start_time, L, axis=0)  # (L, d)
    bias_fused = (b1 @ w2a.T)[None, :] + pe @ w2b.T + b2[None, :]           # (L, d)
    bias_fused = bias_fused.astype(jnp.float32)
    w_fused = w_fused.astype(jnp.float32)

    # --- Row tiling over batch ----------------------------------------------
    # Aim for ~1024 rows / <=4 MiB output block per grid step; no per-batch
    # copy of the positional term is needed because bias is indexed by L only.
    if batch_tile is None:
        target_rows = max(8, min(1024, (4 * 1024 * 1024) // (4 * max(d_model, 1))))
        batch_tile = max(1, min(B, target_rows // max(L, 1)))
    n_tiles = pl.cdiv(B, batch_tile)
    Bp = n_tiles * batch_tile
    if Bp != B:
        x = jnp.pad(x, ((0, Bp - B), (0, 0), (0, 0)))       # padded rows sliced off below

    out = pl.pallas_call(
        _embed_kernel,
        out_shape=jax.ShapeDtypeStruct((Bp, L, d_model), x.dtype),
        grid_spec=pltpu.PrefetchScalarGridSpec(
            num_scalar_prefetch=0,
            grid=(n_tiles,),
            in_specs=[
                pl.BlockSpec((batch_tile, L, input_dim), lambda i: (i, 0, 0)),
                pl.BlockSpec((L, d_model), lambda i: (0, 0)),          # resident
                pl.BlockSpec((input_dim, d_model), lambda i: (0, 0)),  # resident
            ],
            out_specs=pl.BlockSpec((batch_tile, L, d_model), lambda i: (i, 0, 0)),
        ),
        compiler_params=pltpu.CompilerParams(dimension_semantics=("parallel",)),
    )(x, bias_fused, w_fused)
    return out[:B]


def sinusoidal_pos_encoding(max_len, d_model):
    """Standard transformer sinusoidal positional encoding, shape (max_len, d_model)."""
    pos = jnp.arange(max_len, dtype=jnp.float32)[:, None]
    div = jnp.exp(
        jnp.arange(0, d_model, 2, dtype=jnp.float32) * (-math.log(10000.0) / d_model)
    )
    pe = jnp.zeros((max_len, d_model), dtype=jnp.float32)
    pe = pe.at[:, 0::2].set(jnp.sin(pos * div))
    pe = pe.at[:, 1::2].set(jnp.cos(pos * div))
    return pe


def reference(x, pos_encoding, w1, b1, w2, b2, start_time=0):
    """Pure-JAX mirror of the PyTorch forward (dropout = identity in eval)."""
    B, L, _ = x.shape
    d_model = w1.shape[0]
    h = x @ w1.T + b1                                   # (B, L, d)
    pe = pos_encoding[start_time:start_time + L]        # (L, d)
    pe = jnp.broadcast_to(pe[None], (B, L, d_model))    # repeat_interleave over batch
    cat = jnp.concatenate([h, pe], axis=2)              # (B, L, 2d)
    return cat @ w2.T + b2                              # (B, L, d)


if __name__ == "__main__":
    # Shapes consistent with the module defaults:
    # x: (batch=2, obs_length=8, input_dim=2), d_model=256, max_len=12
    B, L, input_dim = 2, 8, 2
    d_model, max_len = 256, 12
    start_time = 2

    key = jax.random.PRNGKey(0)
    kx, k1, k2, k3, k4 = jax.random.split(key, 5)

    x = jax.random.normal(kx, (B, L, input_dim), dtype=jnp.float32)

    # Deterministic synthetic "Linear" parameters (PyTorch-style init bounds).
    bound1 = 1.0 / math.sqrt(input_dim)
    w1 = jax.random.uniform(k1, (d_model, input_dim), jnp.float32, -bound1, bound1)
    b1 = jax.random.uniform(k2, (d_model,), jnp.float32, -bound1, bound1)
    bound2 = 1.0 / math.sqrt(2 * d_model)
    w2 = jax.random.uniform(k3, (d_model, 2 * d_model), jnp.float32, -bound2, bound2)
    b2 = jax.random.uniform(k4, (d_model,), jnp.float32, -bound2, bound2)

    pos_encoding = sinusoidal_pos_encoding(max_len, d_model)

    out = one_input_embedding(x, pos_encoding, w1, b1, w2, b2, start_time=start_time)
    out = jax.block_until_ready(out)

    ref = reference(x, pos_encoding, w1, b1, w2, b2, start_time=start_time)
    assert out.shape == (B, L, d_model)
    # Affine fusion reorders float accumulation slightly; tolerance reflects that.
    assert jnp.allclose(out, ref, atol=1e-4, rtol=1e-4), "mismatch vs. pure-JAX reference"

    print("KERNEL_OK")
</pallas_src>

<mosaic_0001>
module attributes {stable_mosaic.version = 11 : i64} {
  func.func @_embed_kernel(%arg0: i32, %arg1: memref<2x8x2xf32, #tpu.memory_space<vmem>>, %arg2: memref<8x256xf32, #tpu.memory_space<vmem>>, %arg3: memref<2x256xf32, #tpu.memory_space<vmem>>, %arg4: memref<2x8x256xf32, #tpu.memory_space<vmem>>) attributes {dimension_semantics = [#tpu.dimension_semantics<parallel>], iteration_bounds = array<i64: 1>, scalar_prefetch = 0 : i64, scratch_operands = 0 : i64, tpu.core_type = #tpu.core_type<tc>, window_params = [{transform_indices = @transform_0, window_bounds = array<i64: 2, 8, 2>}, {pipeline_mode = #tpu.pipeline_mode<synchronous>, transform_indices = @transform_1, window_bounds = array<i64: 8, 256>}, {pipeline_mode = #tpu.pipeline_mode<synchronous>, transform_indices = @transform_2, window_bounds = array<i64: 2, 256>}, {transform_indices = @transform_3, window_bounds = array<i64: 2, 8, 256>}]} {
    %c0 = arith.constant 0 : index
    %c0_0 = arith.constant 0 : index
    %c0_1 = arith.constant 0 : index
    %0 = vector.load %arg1[%c0, %c0_0, %c0_1] : memref<2x8x2xf32, #tpu.memory_space<vmem>>, vector<2x8x2xf32>
    %c0_2 = arith.constant 0 : index
    %c0_3 = arith.constant 0 : index
    %1 = vector.load %arg3[%c0_2, %c0_3] : memref<2x256xf32, #tpu.memory_space<vmem>>, vector<2x256xf32>
    %c0_4 = arith.constant 0 : index
    %c0_5 = arith.constant 0 : index
    %2 = vector.load %arg2[%c0_4, %c0_5] : memref<8x256xf32, #tpu.memory_space<vmem>>, vector<8x256xf32>
    %3 = vector.shape_cast %2 : vector<8x256xf32> to vector<1x8x256xf32>
    %4 = vector.shape_cast %3 : vector<1x8x256xf32> to vector<1x8x256xf32>
    %5 = vector.broadcast %4 : vector<1x8x256xf32> to vector<2x8x256xf32>
    %6 = vector.extract_strided_slice %0 {offsets = [0, 0, 0], sizes = [2, 8, 1], strides = [1, 1, 1]} : vector<2x8x2xf32> to vector<2x8x1xf32>
    %7 = vector.extract_strided_slice %1 {offsets = [0, 0], sizes = [1, 256], strides = [1, 1]} : vector<2x256xf32> to vector<1x256xf32>
    %8 = vector.shape_cast %7 : vector<1x256xf32> to vector<1x1x256xf32>
    %9 = vector.broadcast %6 : vector<2x8x1xf32> to vector<2x8x256xf32>
    %10 = vector.broadcast %8 : vector<1x1x256xf32> to vector<2x8x256xf32>
    %11 = arith.mulf %9, %10 : vector<2x8x256xf32>
    %12 = arith.addf %5, %11 : vector<2x8x256xf32>
    %13 = vector.extract_strided_slice %0 {offsets = [0, 0, 1], sizes = [2, 8, 1], strides = [1, 1, 1]} : vector<2x8x2xf32> to vector<2x8x1xf32>
    %14 = vector.extract_strided_slice %1 {offsets = [1, 0], sizes = [1, 256], strides = [1, 1]} : vector<2x256xf32> to vector<1x256xf32>
    %15 = vector.shape_cast %14 : vector<1x256xf32> to vector<1x1x256xf32>
    %16 = vector.broadcast %13 : vector<2x8x1xf32> to vector<2x8x256xf32>
    %17 = vector.broadcast %15 : vector<1x1x256xf32> to vector<2x8x256xf32>
    %18 = arith.mulf %16, %17 : vector<2x8x256xf32>
    %19 = arith.addf %12, %18 : vector<2x8x256xf32>
    %c0_6 = arith.constant 0 : index
    %c0_7 = arith.constant 0 : index
    %c0_8 = arith.constant 0 : index
    %20 = vector.load %arg4[%c0_6, %c0_7, %c0_8] : memref<2x8x256xf32, #tpu.memory_space<vmem>>, vector<2x8x256xf32>
    tpu.vector_store %arg4[%c0_6, %c0_7, %c0_8], %19 {strides = array<i32>} : memref<2x8x256xf32, #tpu.memory_space<vmem>>, vector<2x8x256xf32>,
    return
  }
  func.func @transform_0(%arg0: i32) -> (i32, i32, i32) {
    %c0_i32 = arith.constant 0 : i32
    %c0_i32_0 = arith.constant 0 : i32
    %c0_i32_1 = arith.constant 0 : i32
    return %arg0, %c0_i32, %c0_i32_0 : i32, i32, i32
  }
  func.func @transform_1(%arg0: i32) -> (i32, i32) {
    %c0_i32 = arith.constant 0 : i32
    %c0_i32_0 = arith.constant 0 : i32
    %c0_i32_1 = arith.constant 0 : i32
    return %c0_i32, %c0_i32_0 : i32, i32
  }
  func.func @transform_2(%arg0: i32) -> (i32, i32) {
    %c0_i32 = arith.constant 0 : i32
    %c0_i32_0 = arith.constant 0 : i32
    %c0_i32_1 = arith.constant 0 : i32
    return %c0_i32, %c0_i32_0 : i32, i32
  }
  func.func @transform_3(%arg0: i32) -> (i32, i32, i32) {
    %c0_i32 = arith.constant 0 : i32
    %c0_i32_0 = arith.constant 0 : i32
    %c0_i32_1 = arith.constant 0 : i32
    return %arg0, %c0_i32, %c0_i32_0 : i32, i32, i32
  }
}

</mosaic_0001>

<bundles_post_ra>
// kernel: tpu_custom_call.1
= control target key start
LH: loop header
LB: loop body
LE: loop exit
PB: predicated region body
PF: predicated region fallthrough
CT: control target
= control target key end

     0   :  { %v123_v1 = vmov 1   ;;  %v124_v2 = vmov 0   ;;  %s166_s0 = inlined_call_operand.vmem [shape: f32[2,8,2], index: 0, kind: input, shape index: {}]   ;;  %s167_s1 = inlined_call_operand.vmem [shape: f32[8,256], index: 1, kind: input, shape index: {}]   ;;  %s168_s2 = inlined_call_operand.vmem [shape: f32[2,256], index: 2, kind: input, shape index: {}]   ;;  %s169_s3 = inlined_call_operand.hbm [shape: f32[2,8,256], index: 3, kind: output, shape index: {}]  }
   0x1   :  { %v15_v0 = vld [vmem:[%s166_s0] sm:$0xff]  ;;  %95 = vset.pattern.permute.xlu1 %v123_v1  ;;  %94 = vset.pattern.permute.xlu0 %v124_v2 }
   0x2   :  { %8 = vsyncpa [#allocation3], 0  ;;  %46 = vperm.xlu1 %95, %v15_v0   ;;  %22 = vperm.xlu0 %94, %v15_v0   ;;  %v16_v3 = vld [vmem:[%s166_s0 + $0x8] sm:$0xff]  ;;  %v17_v4 = vld [vmem:[%s168_s2] sm:$0xf]  ;;  %s125_s2 = smov [#allocation2]  }
   0x3   :  { %v53_v5 = vperm.slane %v17_v4, 1  ;;  %v54_v6 = vperm.slane %v17_v4, 3  ;;  %v31_v7 = vperm.slane %v17_v4, 0  ;;  %v32_v8 = vperm.slane %v17_v4, 2  ;;  %v18_v15 = vld [vmem:[%s167_s1] sm:$0xff]  ;;  %v19_v16 = vld [vmem:[%s167_s1 + $0x8] sm:$0xff] }
   0x4   :  { %s75_s21 = sshll.u32 %s125_s2, 4  ;;  %s77_s1 = sshll.u32 %s169_s3, 4  ;;  %s76_s21 = int_to_ptr.vmem [resolvable:$true] %s75_s21  ;;  %s78_s1 = int_to_ptr.hbm [resolvable:$true] %s77_s1 }
   0x5   :  { %v57_v9 = vperm.slane %v53_v5, 1  ;;  %v58_v10 = vperm.slane %v54_v6, 1  ;;  %v35_v11 = vperm.slane %v31_v7, 0  ;;  %v36_v12 = vperm.slane %v32_v8, 0  ;;  %s126_s24 = smov 256   ;;  %s127_s25 = smov 16  }
   0xa   :  { %50 = vperm.xlu1 %95, %v16_v3   ;;  %27 = vperm.xlu0 %94, %v16_v3  }
  0x12   :  { %96 = vset.pattern.permute.xlu0 %v123_v1 }
  0x74   :  { %v47_v13 = vpop.permute.xlu1 %46  ;;  %v23_v14 = vpop.permute.xlu0 %22 }
  0x75   :  { %v59_v17 = vmul.f32 %v57_v9, %v47_v13  ;;  %v60_v18 = vmul.f32 %v58_v10, %v47_v13  ;;  %v37_v19 = vmul.f32 %v35_v11, %v23_v14  ;;  %v38_v20 = vmul.f32 %v36_v12, %v23_v14 }
  0x77   :  { %v41_v21 = vadd.f32 %v37_v19, %v18_v15  ;;  %v42_v22 = vadd.f32 %v38_v20, %v19_v16 }
  0x79   :  { %v63_v23 = vadd.f32 %v59_v17, %v41_v21  ;;  %v64_v24 = vadd.f32 %v60_v18, %v42_v22 }
  0x7b   :  { %67 = vst [vmem:[#allocation2] sm:$0xff] %v63_v23 }
  0x7c   :  { %v51_v25 = vpop.permute.xlu1 %50  ;;  %68 = vst [vmem:[#allocation2 + $0x8] sm:$0xff] %v64_v24  ;;  %v28_v26 = vpop.permute.xlu0 %27 }
  0x7d   :  { %v39_v27 = vmul.f32 %v35_v11, %v28_v26  ;;  %v40_v28 = vmul.f32 %v36_v12, %v28_v26  ;;  %v61_v29 = vmul.f32 %v57_v9, %v51_v25  ;;  %v62_v30 = vmul.f32 %v58_v10, %v51_v25 }
  0x7f   :  { %v43_v31 = vadd.f32 %v39_v27, %v18_v15  ;;  %v44_v32 = vadd.f32 %v40_v28, %v19_v16 }
  0x81   :  { %v65_v33 = vadd.f32 %v61_v29, %v43_v31  ;;  %v66_v34 = vadd.f32 %v62_v30, %v44_v32 }
  0x83   :  { %69 = vst [vmem:[#allocation2 + $0x10] sm:$0xff] %v65_v33 }
  0x84   :  { %70 = vst [vmem:[#allocation2 + $0x18] sm:$0xff] %v66_v34 }
  0x85   :  { %83 = dma.vmem_to_hbm [thread:$0]  %s76_s21, 512, %s78_s1, [#allocation3], %s126_s24, %s126_s24, %s127_s25  }
  0x86   :  { %121 = dma.done.wait [#allocation3], 512  }
  0x87   :  { %122 = vsyncadd [#allocation3], 4294966784 }
  0x88   :  { %88 = vsyncpa [#allocation3], 1 }

</bundles_post_ra>
